<compile_context>
chip_gen: v7x
topology: tpu7x:2x2x1
jax: 0.10.0
libtpu: 0.0.40
codegen_flags: <defaults>
</compile_context>

<pallas_src>
import functools

import jax
import jax.numpy as jnp
from jax.experimental import pallas as pl
from jax.experimental.pallas import tpu as pltpu


# ---------------------------------------------------------------------------
# Hardware-aware sizing helpers.
# ---------------------------------------------------------------------------
def _physical_vmem_bytes():
    """Per-core VMEM capacity; conservative fallback if the query fails."""
    try:
        info = pltpu.get_tpu_info()
        for name in ("vmem_capacity_bytes", "vmem_size_bytes", "vmem_bytes"):
            v = getattr(info, name, None)
            if v:
                return int(v)
    except Exception:
        pass
    return 64 * 1024 * 1024  # smallest per-TC VMEM in the fleet (v7x-like)


def _generation_params():
    """(vmem_limit_bytes, input-block byte budget, want >=2 parallel grid steps)."""
    phys = _physical_vmem_bytes()
    if phys >= 96 * 1024 * 1024:
        # v5e / v6e: 128 MiB VMEM, 1 TensorCore per chip.
        return 64 * 1024 * 1024, 16 * 1024 * 1024, False
    # v7x-like: 64 MiB per-TC VMEM, 2 TCs per chip share the HBM stream ->
    # smaller block budget + make sure both cores get work.
    return 40 * 1024 * 1024, 8 * 1024 * 1024, True


def _sublane_align(dtype):
    """Min second-to-last block dim: 8 for 4-byte, 16 for 2-byte, 32 for 1-byte."""
    return max(8, 32 // jnp.dtype(dtype).itemsize)


def _divisors(dim):
    out = set()
    i = 1
    while i * i <= dim:
        if dim % i == 0:
            out.add(i)
            out.add(dim // i)
        i += 1
    return sorted(out, reverse=True)


def _divisors_aligned(dim, align):
    """Divisors of `dim` that are multiples of `align`, plus `dim` itself
    (a full-extent block dim is always legal), sorted descending."""
    cands = {dim}
    for d in _divisors(dim):
        if d % align == 0:
            cands.add(d)
    return sorted(cands, reverse=True)


def _select_tiles_3d(n, c, f, itemsize, budget, sub, want_two):
    """Pick (tn, tc, tf) so the input block ~ hits the byte budget."""
    f_cands = _divisors_aligned(f, 128)   # lane-dense or full-F
    c_cands = _divisors_aligned(c, sub)   # sublane-aligned or full-C
    n_cands = _divisors_aligned(n, sub)   # output block's 2nd-to-last dim

    # 2-TC chips: guarantee >= 2 grid steps on a parallel axis (prefer N).
    if want_two:
        if any(n // d >= 2 for d in n_cands):
            n_cands = [d for d in n_cands if n // d >= 2]
        elif any(f // d >= 2 for d in f_cands):
            f_cands = [d for d in f_cands if f // d >= 2]

    min_tc = c_cands[-1]
    # tf: biggest tile (prefer full, contiguous F rows) whose minimal slab fits.
    tf = next((d for d in f_cands if d * min_tc * itemsize <= budget), f_cands[-1])
    # tc: grow the reduction chunk until a (1, tc, tf) slab hits the budget.
    tc = next((d for d in c_cands if tf * d * itemsize <= budget), c_cands[-1])
    # tn: spend whatever budget is left on batch rows.
    tn = next((d for d in n_cands if d * tc * tf * itemsize <= budget), n_cands[-1])
    return tn, tc, tf


def _select_tiles_2d(n, d, itemsize, budget, sub, want_two):
    d_cands = _divisors_aligned(d, 128)
    n_cands = _divisors_aligned(n, sub)
    if want_two and any(n // t >= 2 for t in n_cands):
        n_cands = [t for t in n_cands if n // t >= 2]
    min_tn = n_cands[-1]
    tc = next((t for t in d_cands if t * min_tn * itemsize <= budget), d_cands[-1])
    tn = next((t for t in n_cands if t * tc * itemsize <= budget), n_cands[-1])
    return tn, tc


# ---------------------------------------------------------------------------
# >= 3-D inputs: reduce over the channel axis of an (N, C, F) view.
# ---------------------------------------------------------------------------
def _abs_mean_c_kernel_f32(x_ref, o_ref, *, inv_c):
    # x_ref: (tn, tc, tf)  o_ref: (tn, tf) float32, resident across the C axis
    # -> the output block itself is the accumulator (no scratch, no final copy).
    k = pl.program_id(2)

    @pl.when(k == 0)
    def _():
        o_ref[...] = jnp.zeros_like(o_ref)

    o_ref[...] += jnp.sum(jnp.abs(x_ref[...]), axis=1)

    @pl.when(k == pl.num_programs(2) - 1)
    def _():
        o_ref[...] = o_ref[...] * inv_c     # hoisted 1/C constant multiply


def _abs_mean_c_kernel_scratch(x_ref, o_ref, acc_ref, *, inv_c):
    # Non-f32 dtypes: accumulate in an f32 VMEM scratch, cast once at the end.
    k = pl.program_id(2)

    @pl.when(k == 0)
    def _():
        acc_ref[...] = jnp.zeros_like(acc_ref)

    acc_ref[...] += jnp.sum(jnp.abs(x_ref[...]).astype(jnp.float32), axis=1)

    @pl.when(k == pl.num_programs(2) - 1)
    def _():
        o_ref[...] = (acc_ref[...] * inv_c).astype(o_ref.dtype)


def _abs_mean_axis1_3d(x3):
    """x3: (N, C, F) -> (N, F) = mean(|x3|, axis=1)."""
    n, c, f = x3.shape
    itemsize = jnp.dtype(x3.dtype).itemsize
    vmem_limit, budget, want_two = _generation_params()
    sub = _sublane_align(x3.dtype)
    tn, tc, tf = _select_tiles_3d(n, c, f, itemsize, budget, sub, want_two)
    grid = (n // tn, f // tf, c // tc)

    if x3.dtype == jnp.float32:
        kernel = functools.partial(_abs_mean_c_kernel_f32, inv_c=1.0 / c)
        scratch = ()
    else:
        kernel = functools.partial(_abs_mean_c_kernel_scratch, inv_c=1.0 / c)
        scratch = (pltpu.VMEM((tn, tf), jnp.float32),)

    return pl.pallas_call(
        kernel,
        out_shape=jax.ShapeDtypeStruct((n, f), x3.dtype),
        grid=grid,
        in_specs=[pl.BlockSpec((tn, tc, tf), lambda i, j, k: (i, k, j))],
        out_specs=pl.BlockSpec((tn, tf), lambda i, j, k: (i, j)),
        scratch_shapes=scratch,
        compiler_params=pltpu.CompilerParams(
            dimension_semantics=("parallel", "parallel", "arbitrary"),
            vmem_limit_bytes=vmem_limit,
        ),
    )(x3)


# ---------------------------------------------------------------------------
# 2-D inputs: reduce over the lane (dim=1) axis of (N, D).
# ---------------------------------------------------------------------------
def _abs_mean_lane_kernel(x_ref, o_ref, acc_ref, *, inv_c):
    # x_ref: (tn, tc)  o_ref: (tn, 1)  acc_ref: (tn, 1) f32 scratch
    k = pl.program_id(1)

    @pl.when(k == 0)
    def _():
        acc_ref[...] = jnp.zeros_like(acc_ref)

    a = jnp.abs(x_ref[...]).astype(jnp.float32)
    acc_ref[...] += jnp.sum(a, axis=-1, keepdims=True)

    @pl.when(k == pl.num_programs(1) - 1)
    def _():
        o_ref[...] = (acc_ref[...] * inv_c).astype(o_ref.dtype)


def _abs_mean_axis1_2d(x2):
    """x2: (N, D) -> (N,) = mean(|x2|, axis=1)."""
    n, d = x2.shape
    itemsize = jnp.dtype(x2.dtype).itemsize
    vmem_limit, budget, want_two = _generation_params()
    sub = _sublane_align(x2.dtype)
    tn, tc = _select_tiles_2d(n, d, itemsize, budget, sub, want_two)
    grid = (n // tn, d // tc)
    kernel = functools.partial(_abs_mean_lane_kernel, inv_c=1.0 / d)
    out = pl.pallas_call(
        kernel,
        out_shape=jax.ShapeDtypeStruct((n, 1), x2.dtype),
        grid=grid,
        in_specs=[pl.BlockSpec((tn, tc), lambda i, k: (i, k))],
        out_specs=pl.BlockSpec((tn, 1), lambda i, k: (i, 0)),
        scratch_shapes=(pltpu.VMEM((tn, 1), jnp.float32),),
        compiler_params=pltpu.CompilerParams(
            dimension_semantics=("parallel", "arbitrary"),
            vmem_limit_bytes=vmem_limit,
        ),
    )(x2)
    return out[:, 0]


# ---------------------------------------------------------------------------
# Public entry point == BetaVector.forward
# ---------------------------------------------------------------------------
def beta_vector_forward(x):
    """Pallas equivalent of BetaVector.forward: mean(|x|, dim=1)."""
    s = x.shape
    if len(s) < 2:
        raise ValueError("BetaVector expects an input with at least 2 dims")
    if not jnp.issubdtype(x.dtype, jnp.floating):
        # torch.mean raises on integer tensors; mirror that instead of
        # silently truncating an f32 mean back to an integer dtype.
        raise TypeError("BetaVector (torch.mean) requires a floating-point input")
    n, c = s[0], s[1]
    rest = s[2:]
    if not rest:
        return _abs_mean_axis1_2d(x)
    f = 1
    for d in rest:
        f *= d
    out2d = _abs_mean_axis1_3d(x.reshape(n, c, f))   # layout-preserving reshape
    return out2d.reshape((n,) + rest)


if __name__ == "__main__":
    key = jax.random.PRNGKey(0)
    k1, k2, k3, k4 = jax.random.split(key, 4)

    # Primary case: NCHW input, batch=2, channels=4, spatial=16x16.
    x4 = jax.random.normal(k1, (2, 4, 16, 16), dtype=jnp.float32)
    out4 = jax.block_until_ready(beta_vector_forward(x4))
    ref4 = jnp.mean(jnp.abs(x4), axis=1)
    assert out4.shape == (2, 16, 16) and out4.dtype == x4.dtype
    assert jnp.allclose(out4, ref4, atol=1e-5, rtol=1e-5)

    # Larger case exercising multi-tile grids / parallel axes / budget tiling.
    x4b = jax.random.normal(k2, (16, 128, 16, 16), dtype=jnp.float32)
    out4b = jax.block_until_ready(beta_vector_forward(x4b))
    ref4b = jnp.mean(jnp.abs(x4b), axis=1)
    assert out4b.shape == (16, 16, 16)
    assert jnp.allclose(out4b, ref4b, atol=1e-5, rtol=1e-5)

    # bf16 case: exercises the f32-scratch kernel and 16-row sublane alignment.
    x4c = jax.random.normal(k3, (4, 32, 16, 16), dtype=jnp.bfloat16)
    out4c = jax.block_until_ready(beta_vector_forward(x4c))
    ref4c = jnp.mean(jnp.abs(x4c.astype(jnp.float32)), axis=1).astype(jnp.bfloat16)
    assert out4c.shape == (4, 16, 16) and out4c.dtype == jnp.bfloat16
    assert jnp.allclose(out4c.astype(jnp.float32), ref4c.astype(jnp.float32),
                        atol=1e-2, rtol=1e-2)

    # 2-D case: mean over dim=1 -> shape (N,).
    x2 = jax.random.normal(k4, (8, 128), dtype=jnp.float32)
    out2 = jax.block_until_ready(beta_vector_forward(x2))
    ref2 = jnp.mean(jnp.abs(x2), axis=1)
    assert out2.shape == (8,)
    assert jnp.allclose(out2, ref2, atol=1e-5, rtol=1e-5)

    print("KERNEL_OK")
</pallas_src>

<mosaic_0001>
module attributes {stable_mosaic.version = 11 : i64} {
  func.func @_abs_mean_c_kernel_f32(%arg0: i32, %arg1: i32, %arg2: i32, %arg3: memref<2x4x128xf32, #tpu.memory_space<vmem>>, %arg4: memref<2x128xf32, #tpu.memory_space<vmem>>) attributes {dimension_semantics = [#tpu.dimension_semantics<parallel>, #tpu.dimension_semantics<parallel>, #tpu.dimension_semantics<arbitrary>], iteration_bounds = array<i64: 1, 2, 1>, scalar_prefetch = 0 : i64, scratch_operands = 0 : i64, tpu.core_type = #tpu.core_type<tc>, window_params = [{transform_indices = @transform_0, window_bounds = array<i64: 2, 4, 128>}, {transform_indices = @transform_1, window_bounds = array<i64: 2, 128>}]} {
    %c0_i32 = arith.constant 0 : i32
    %0 = arith.cmpi eq, %arg2, %c0_i32 : i32
    %1 = arith.extui %0 : i1 to i32
    %c0_i32_0 = arith.constant 0 : i32
    %2 = arith.cmpi ne, %1, %c0_i32_0 : i32
    scf.if %2 {
      %cst_9 = arith.constant 0.000000e+00 : f32
      %12 = vector.broadcast %cst_9 : f32 to vector<2x128xf32>
      %c0_10 = arith.constant 0 : index
      %c0_11 = arith.constant 0 : index
      %13 = vector.load %arg4[%c0_10, %c0_11] : memref<2x128xf32, #tpu.memory_space<vmem>>, vector<2x128xf32>
      tpu.vector_store %arg4[%c0_10, %c0_11], %12 {strides = array<i32>} : memref<2x128xf32, #tpu.memory_space<vmem>>, vector<2x128xf32>,
    } else {
    }
    %c0 = arith.constant 0 : index
    %c0_1 = arith.constant 0 : index
    %3 = vector.load %arg4[%c0, %c0_1] : memref<2x128xf32, #tpu.memory_space<vmem>>, vector<2x128xf32>
    %c0_2 = arith.constant 0 : index
    %c0_3 = arith.constant 0 : index
    %c0_4 = arith.constant 0 : index
    %4 = vector.load %arg3[%c0_2, %c0_3, %c0_4] : memref<2x4x128xf32, #tpu.memory_space<vmem>>, vector<2x4x128xf32>
    %5 = math.absf %4 : vector<2x4x128xf32>
    %cst = arith.constant dense<0.000000e+00> : vector<2x128xf32>
    %6 = vector.multi_reduction <add>, %5, %cst [1] : vector<2x4x128xf32> to vector<2x128xf32>
    %7 = arith.addf %3, %6 : vector<2x128xf32>
    %c0_5 = arith.constant 0 : index
    %c0_6 = arith.constant 0 : index
    %8 = vector.load %arg4[%c0_5, %c0_6] : memref<2x128xf32, #tpu.memory_space<vmem>>, vector<2x128xf32>
    tpu.vector_store %arg4[%c0_5, %c0_6], %7 {strides = array<i32>} : memref<2x128xf32, #tpu.memory_space<vmem>>, vector<2x128xf32>,
    %c0_i32_7 = arith.constant 0 : i32
    %9 = arith.cmpi eq, %arg2, %c0_i32_7 : i32
    %10 = arith.extui %9 : i1 to i32
    %c0_i32_8 = arith.constant 0 : i32
    %11 = arith.cmpi ne, %10, %c0_i32_8 : i32
    scf.if %11 {
      %c0_9 = arith.constant 0 : index
      %c0_10 = arith.constant 0 : index
      %12 = vector.load %arg4[%c0_9, %c0_10] : memref<2x128xf32, #tpu.memory_space<vmem>>, vector<2x128xf32>
      %cst_11 = arith.constant 2.500000e-01 : f32
      %13 = vector.broadcast %cst_11 : f32 to vector<2x128xf32>
      %14 = arith.mulf %12, %13 : vector<2x128xf32>
      %c0_12 = arith.constant 0 : index
      %c0_13 = arith.constant 0 : index
      %15 = vector.load %arg4[%c0_12, %c0_13] : memref<2x128xf32, #tpu.memory_space<vmem>>, vector<2x128xf32>
      tpu.vector_store %arg4[%c0_12, %c0_13], %14 {strides = array<i32>} : memref<2x128xf32, #tpu.memory_space<vmem>>, vector<2x128xf32>,
    } else {
    }
    return
  }
  func.func @transform_0(%arg0: i32, %arg1: i32, %arg2: i32) -> (i32, i32, i32) {
    %c0_i32 = arith.constant 0 : i32
    return %arg0, %arg2, %arg1 : i32, i32, i32
  }
  func.func @transform_1(%arg0: i32, %arg1: i32, %arg2: i32) -> (i32, i32) {
    %c0_i32 = arith.constant 0 : i32
    return %arg0, %arg1 : i32, i32
  }
}

</mosaic_0001>

<bundles_post_ra>
// kernel: tpu_custom_call.1
= control target key start
LH: loop header
LB: loop body
LE: loop exit
PB: predicated region body
PF: predicated region fallthrough
CT: control target
= control target key end

     0   :  { %6 = vsyncpa [#allocation3], 0  ;;  %s695_s0 = inlined_call_operand.hbm [shape: f32[2,4,256], index: 0, kind: input, shape index: {}]   ;;  %s696_s1 = inlined_call_operand.hbm [shape: f32[2,256], index: 1, kind: output, shape index: {}]  }
   0x1   :  { %8 = vsyncpa [#allocation3 + $0x1], 0 }
   0x2   :  { %9 = vsyncpa [#allocation4], 0 }
   0x3   :  { %11 = vsyncpa [#allocation4 + $0x1], 0  ;;  %s515_s6 = smov 0   ;;  %s517_s7 = smov 0  }
   0x4   :  { %s519_s8 = smov 0   ;;  %s521_s9 = smov 0  }
   0x5   :  { %s523_s10 = smov 0   ;;  %s525_s11 = smov 0  }
   0x6 LB: > { %s306_s12 = sadd.s32 4294967295, %s497_s11   ;;  %s307_s13 = sadd.s32 4294967294, %s497_s11   ;;  %s497_s11 = sphi %s525_s11, %s17_s11   ;;  %s493_s10 = sphi %s523_s10, %s710_s10   ;;  %s489_s9 = sphi %s521_s9, %s709_s9   ;;  %s485_s8 = sphi %s519_s8, %s708_s8   ;;  %s481_s7 = sphi %s517_s7, %s707_s7   ;;  %s477_s6 = sphi %s515_s6, %s706_s6  }
   0x7   : > { %s32_s14 = sadd.s32 1, %s493_s10  ;;  %s47_s15 = sadd.s32 1, %s485_s8 }
   0x8   : > { %p34_p0 = scmp.ge.s32.totalorder %s32_s14, 2  ;;  %p54_p1 = scmp.ne.s32.totalorder %s485_s8, %s481_s7 }
   0x9   : > { %p55_p2 = scmp.eq.s32.totalorder %s497_s11, 0  ;;  %p60_p3 = scmp.ne.s32.totalorder %s481_s7, %s477_s6 }
   0xa   : > { %s712_s14 = smov (%p34_p0, %s32_s14), 0  ;;  %p61_p5 = scmp.eq.s32.totalorder %s306_s12, 0 }
   0xb   : > { %p556_p4 = por %p55_p2, %p54_p1  ;;  %s43_s17 = ssub.s32 %s493_s10, %s712_s14 }
   0xc   : > { %p86_p6 = scmp.eq.s32.totalorder %s306_s12, 1  ;;  %p45_p7 = scmp.eq.s32.totalorder %s43_s17, 0 }
   0xd   : > { %p562_p8 = por %p61_p5, %p60_p3  ;;  %p92_p10 = scmp.eq.s32.totalorder %s307_s13, 1 }
   0xe   : > { %p566_p9 = por %p86_p6, %p54_p1  ;;  %p331_p13 = scmp.lt.s32.totalorder %s497_s11, 2 }
   0xf   : > { %s571_s20 = scalar_select %p45_p7, %s485_s8, %s47_s15  }
  0x10   : > { %s700_s19 = scalar_select %p566_p9, 1, 0 }
  0x11   : > { %p573_p11 = por %p92_p10, %p60_p3  ;;  %s112_s22 = sand.u32 1, %s485_s8  }
  0x12   : > { %s310_s23 = sshll.u32 %s112_s22, 3  ;;  %s311_s24 = sshll.u32 %s493_s10, 6 }
  0x13   : > { %s701_s21 = scalar_select %p573_p11, 1, 0 }
  0x14   : > { %s584_s27 = scalar_lea.hbm %s695_s0, %s311_s24  ;;  %s116_s28 = scalar_lea.vmem [#allocation2], %s310_s23 }
  0x15   : > { %s127_s29 = sshll.u32 %s116_s28, 4  ;;  %p590_p0 = pnand %p331_p13, %p556_p4  ;;  %s586_s29 = int_to_ptr.vmem [resolvable:$true] %s127_s29 }
  0x16   : > { %s594_s2 = scalar_lea.sflag [#allocation3], %s112_s22  ;;  %s385_s3 = scalar_lea.hbm %s584_s27, 128 }
  0x17   : > { %p386_p1 = scmp.ne.s32.totalorder %s584_s27, %s385_s3  ;;  %p387_p2 = pneg %p590_p0 }
  0x18   : > { %s390_s12 = scalar_lea.hbm %s695_s0, 256  ;;  %p391_p4 = scmp.lt.u32.totalorder %s584_s27, %s695_s0 }
  0x19   : > { %p388_p3 = pnand %p387_p2, %p386_p1  ;;  %p392_p6 = scmp.lt.u32.totalorder %s390_s12, %s385_s3 }
  0x1a   : > { %p394_p10 = scmp.lt.u32.totalorder %s385_s3, %s584_s27 }
  0x1b   : > { %p389_p5 = pneg %p388_p3  ;;  %p393_p7 = por %p392_p6, %p391_p4 }
  0x1d   : > { %p395_p13 = por %p394_p10, %p393_p7 }
  0x1f   : > { %p396_p12 = pnand %p395_p13, %p389_p5 }
  0x21   : > { %399 = shalt.err (!%p396_p12)
}
  0x22   : > { %s400_s16 = scalar_lea.vmem %s586_s29, 128  ;;  %s499_s17 = smov [#allocation2]  }
  0x23   : > { %p401_p1 = scmp.ne.s32.totalorder %s586_s29, %s400_s16  ;;  %s405_s22 = sshll.u32 %s499_s17, 4  ;;  %s406_s22 = int_to_ptr.vmem [resolvable:$false] %s405_s22 }
  0x24   : > { %s407_s23 = scalar_lea.vmem %s406_s22, 256  ;;  %p408_p9 = scmp.lt.s32.totalorder %s586_s29, %s406_s22 }
  0x25   : > { %p403_p3 = pnand %p401_p1, %p387_p2  ;;  %p409_p4 = scmp.lt.s32.totalorder %s407_s23, %s400_s16 }
  0x27   : > { %p404_p11 = pneg %p403_p3  ;;  %p410_p6 = por %p409_p4, %p408_p9 }
  0x29   : > { %p411_p7 = pnand %p410_p6, %p404_p11 }
  0x2b   : > { %414 = shalt.err (!%p411_p7)
}
  0x2c   : > { %s500_s24 = smov 128   ;;  %s501_s25 = smov 64  }
  0x2d   : > { %s502_s26 = smov 4   ;;  %p312_p12 = scmp.ge.s32.totalorder %s497_s11, 1 }
  0x2e   : > { %326 = dma.hbm_to_vmem [thread:$0]  (!%p590_p0), %s584_s27, 128, %s586_s29, %s594_s2, %s500_s24, %s501_s25, %s502_s26  }
  0x2f   : > { %p135_p2 = scmp.lt.s32.totalorder %s497_s11, 3 }
  0x31   : > { %p136_p5 = pnand %p312_p12, %p135_p2 }
  0x32   : > { %s625_s28 = sand.u32 (!%p136_p5), 1, %s481_s7  }
  0x33   : > { %139 = sbr.rel (%p136_p5) target bundleno = 103 (0x67), region = 24  ;;  %s313_s3 = sshll.u32 (!%p136_p5), %s625_s28, 3 }
  0x34   : > { %s142_s4 = scalar_lea.sflag (!%p136_p5), [#allocation3], %s625_s28  ;;  %s145_s5 = scalar_lea.vmem (!%p136_p5), [#allocation2], %s313_s3 }
  0x3a   : > { %468 = dma.done.wait (%p562_p8), %s142_s4, 128  }
  0x3b   : > { %470 = vsyncadd (%p562_p8), %s142_s4, 4294967168  ;;  %s314_s27 = sshll.u32 %s625_s28, 1  ;;  %v503_v0 = vmov 0.0   ;;  %v171_v1 = vld [vmem:[%s145_s5] sm:$0xf]  ;;  %vm175_vm0 = vcmask 1043456  }
  0x3c   : > { %s634_s29 = scalar_lea.vmem [#allocation5], %s314_s27  ;;  %v172_v2 = vld [vmem:[%s145_s5 + $0x4] sm:$0xf]  ;;  %v173_v3 = vand.u32 2147483647, %v171_v1  ;;  %vm192_vm1 = vcmask 1041409  }
  0x3d   : > { %169 = vst [vmem:[%s634_s29] sm:$0x3] %v503_v0  ;;  %v174_v4 = vand.u32 2147483647, %v172_v2  ;;  %s316_s18 = sshll.u32 %s489_s9, 5  ;;  %s219_s30 = sshll.u32 %s634_s29, 4  ;;  %s647_s30 = int_to_ptr.vmem [resolvable:$true] %s219_s30 }
  0x3e   : > { %v176_v5 = vsel %vm175_vm0, %v173_v3, 0.0  ;;  %s645_s13 = scalar_lea.hbm %s696_s1, %s316_s18  ;;  %s204_s15 = scalar_lea.sflag [#allocation4], %s625_s28 }
  0x3f   : > { %v183_v6 = vsel %vm175_vm0, %v174_v4, 0.0  ;;  %v177_v7 = vrot.slane %v176_v5, 4  ;;  %s415_s16 = scalar_lea.vmem %s647_s30, 32  ;;  %p703_p9 = scmp.ne.s32.totalorder %s700_s19, 0 }
  0x40   : > { %v184_v8 = vrot.slane %v183_v6, 4  ;;  %p416_p8 = scmp.ne.s32.totalorder %s647_s30, %s415_s16  ;;  %s504_s9 = smov [#allocation5]  }
  0x41   : > { %v178_v9 = vadd.f32 %v177_v7, %v176_v5  ;;  %s419_s17 = sshll.u32 %s504_s9, 4  ;;  %s420_s17 = int_to_ptr.vmem [resolvable:$false] %s419_s17 }
  0x42   : > { %v185_v10 = vadd.f32 %v184_v8, %v183_v6  ;;  %p417_p11 = pnand %p416_p8, %p703_p9  ;;  %s421_s22 = scalar_lea.vmem %s420_s17, 64 }
  0x43   : > { %v179_v11 = vrot.slane %v178_v9, 2  ;;  %p422_p10 = scmp.lt.s32.totalorder %s647_s30, %s420_s17  ;;  %p423_p13 = scmp.lt.s32.totalorder %s421_s22, %s415_s16 }
  0x44   : > { %v186_v12 = vrot.slane %v185_v10, 2  ;;  %v170_v17 = vld [vmem:[%s634_s29] sm:$0x3]  ;;  %p418_p0 = pneg %p417_p11 }
  0x45   : > { %v180_v13 = vadd.f32 %v179_v11, %v178_v9  ;;  %p424_p1 = por %p423_p13, %p422_p10 }
  0x46   : > { %v187_v14 = vadd.f32 %v186_v12, %v185_v10 }
  0x47   : > { %v181_v15 = vrot.slane %v180_v13, 1  ;;  %p425_p3 = pnand %p424_p1, %p418_p0 }
  0x48   : > { %v188_v16 = vrot.slane %v187_v14, 1 }
  0x49   : > { %v182_v18 = vadd.f32 %v181_v15, %v180_v13 }
  0x4a   : > { %v189_v19 = vadd.f32 %v188_v16, %v187_v14 }
  0x4c   : > { %v193_v20 = vsel %vm192_vm1, %v189_v19, %v182_v18 }
  0x4d   : > { %v195_v21 = vadd.f32 %v193_v20, %v170_v17 }
  0x4f   : > { %196 = vst [vmem:[%s634_s29] sm:$0x3] %v195_v21 }
  0x56   : > { %v200_v22 = vld [vmem:[%s634_s29] sm:$0x3] }
  0x57   : > { %v201_v23 = vmul.f32 0.25, %v200_v22 }
  0x59   : > { %202 = vst [vmem:[%s634_s29] sm:$0x3] %v201_v23 }
  0x5a   : > { %428 = shalt.err (!%p425_p3)
}
  0x5b   : > { %s429_s23 = scalar_lea.hbm %s645_s13, 32  ;;  %s433_s26 = scalar_lea.hbm %s696_s1, 64 }
  0x5c   : > { %p430_p4 = scmp.ne.s32.totalorder %s645_s13, %s429_s23  ;;  %p434_p12 = scmp.lt.u32.totalorder %s645_s13, %s696_s1 }
  0x5d   : > { %p435_p2 = scmp.lt.u32.totalorder %s433_s26, %s429_s23  ;;  %p437_p8 = scmp.lt.u32.totalorder %s429_s23, %s645_s13 }
  0x5e   : > { %p431_p6 = pnand %p430_p4, %p703_p9 }
  0x5f   : > { %p436_p5 = por %p435_p2, %p434_p12 }
  0x60   : > { %p432_p7 = pneg %p431_p6 }
  0x61   : > { %p438_p11 = por %p437_p8, %p436_p5 }
  0x63   : > { %p439_p0 = pnand %p438_p11, %p432_p7 }
  0x65   : > { %442 = shalt.err (!%p439_p0)
}
  0x66   : > { %321 = dma.vmem_to_hbm [thread:$0]  (%p703_p9), %s647_s30, 32, %s645_s13, %s204_s15  }
  0x67 PF: > { %s231_s4 = sand.u32 1, %s477_s6   ;;  %p704_p10 = scmp.ne.s32.totalorder %s701_s21, 0 }
  0x68   : > { %p705_p13 = scmp.ge.s32.totalorder %s497_s11, 2  ;;  %s232_s5 = scalar_lea.sflag [#allocation4], %s231_s4 }
  0x6a   : > { %p328_p1 = pnand %p705_p13, %p704_p10 }
  0x6c   : > { %472 = dma.done.wait (!%p328_p1), %s232_s5, 32  }
  0x6d   : > { %474 = vsyncadd (!%p328_p1), %s232_s5, 4294967264  ;;  %s17_s11 = sadd.s32 1, %s497_s11   ;;  %s706_s6 = smov %s481_s7 }
  0x6e   : > { %p14_p3 = scmp.ge.s32.totalorder %s17_s11, 4   ;;  %s707_s7 = smov %s485_s8 }
  0x6f   : > { %s708_s8 = smov %s571_s20  ;;  %s709_s9 = smov %s493_s10 }
  0x70   : > { %s710_s10 = smov %s712_s14  ;;  %16 = sbr.rel (!%p14_p3) target bundleno = 6 (0x6), region = 77 }
  0x77   :  { %237 = vsyncpa [#allocation3], 1 }
  0x78   :  { %239 = vsyncpa [#allocation3 + $0x1], 1 }
  0x79   :  { %240 = vsyncpa [#allocation4], 1 }
  0x7a   :  { %242 = vsyncpa [#allocation4 + $0x1], 1 }

</bundles_post_ra>
